<compile_context>
chip_gen: v5e
topology: v5e:2x2
jax: 0.10.0
libtpu: 0.0.40
codegen_flags: <defaults>
</compile_context>

<pallas_src>
import jax
import jax.numpy as jnp
from jax.experimental import pallas as pl
from jax.experimental.pallas import tpu as pltpu


# ----------------------------- fused pipeline kernel --------------------------------------

def run_detection_kernel(x, pool_mask, w_eff, b_eff,
                         q_t, wcls_t, bcls_t, wbox_t, bbox_t,
                         *, yc, hid_off, hw_valid, tp, vmem_limit):
    """x: (N, C, HW_pad) channels-on-sublane / pixels-on-lane.  pool_mask: (HW_pad, 1) 0/1.
    Returns (yolo (N, YC, HW_pad), logits^T (N, NCLS, Q), boxes^T (N, 4, Q))."""
    N, C, hw_pad = x.shape
    wtot = w_eff.shape[0]
    hid = wtot - hid_off
    Q = q_t.shape[1]
    ncls = wcls_t.shape[0]
    n_tiles = hw_pad // tp
    inv_count = 1.0 / float(hw_valid)

    def kernel(x_ref, mask_ref, w_ref, b_ref,
               qT_ref, wclsT_ref, bclsT_ref, wboxT_ref, bboxT_ref,
               yolo_ref, logitsT_ref, boxesT_ref, pool_acc):
        p = pl.program_id(1)

        @pl.when(p == 0)
        def _():
            pool_acc[...] = jnp.zeros_like(pool_acc)

        # fused 1x1-conv matmul for YOLO head + DETR backbone; preprocess affine is folded
        # into (w_ref, b_ref) so the raw pixels go straight into the MXU.
        out = jnp.dot(w_ref[...], x_ref[0],
                      preferred_element_type=jnp.float32) + b_ref[...]     # (WTOT, TP)

        # YOLO detection map: (channels, pixels) i.e. NCHW order -> lane-dense store
        yolo_ref[0] = out[:yc]

        # DETR backbone features (ReLU) + fused global mean pool accumulation.
        # Pool reduction as an MXU matvec against a 0/1 mask column: padded tail lanes are
        # zeroed by the mask, and no per-tile iota/select or XLU lane-reduce is needed.
        feat = jnp.maximum(out[hid_off:], 0.0)                             # (HID, TP)
        pool_acc[...] += jnp.dot(feat, mask_ref[...],
                                 preferred_element_type=jnp.float32)       # (HID, 1)

        # finalize: pooled feature -> query-conditioned class/box heads (tiny matmuls)
        @pl.when(p == pl.num_programs(1) - 1)
        def _():
            pooled = pool_acc[...] * inv_count                             # (HID, 1)
            qc = qT_ref[...] + pooled                                      # (HID, Q)
            logitsT_ref[0] = (jnp.dot(wclsT_ref[...], qc,
                                      preferred_element_type=jnp.float32)
                              + bclsT_ref[...])                            # (NCLS, Q)
            bx = (jnp.dot(wboxT_ref[...], qc,
                          preferred_element_type=jnp.float32) + bboxT_ref[...])
            boxesT_ref[0] = jax.nn.sigmoid(bx)                             # (4, Q) in [0,1]

    rep = lambda n, p: (0, 0)
    return pl.pallas_call(
        kernel,
        out_shape=(jax.ShapeDtypeStruct((N, yc, hw_pad), jnp.float32),
                   jax.ShapeDtypeStruct((N, ncls, Q), jnp.float32),
                   jax.ShapeDtypeStruct((N, 4, Q), jnp.float32)),
        grid=(N, n_tiles),
        in_specs=[pl.BlockSpec((1, C, tp), lambda n, p: (n, 0, p)),
                  pl.BlockSpec((tp, 1), lambda n, p: (p, 0)),
                  pl.BlockSpec((wtot, C), rep),
                  pl.BlockSpec((wtot, 1), rep),
                  pl.BlockSpec((hid, Q), rep),
                  pl.BlockSpec((ncls, hid), rep),
                  pl.BlockSpec((ncls, 1), rep),
                  pl.BlockSpec((4, hid), rep),
                  pl.BlockSpec((4, 1), rep)],
        out_specs=[pl.BlockSpec((1, yc, tp), lambda n, p: (n, 0, p)),
                   pl.BlockSpec((1, ncls, Q), lambda n, p: (n, 0, 0)),
                   pl.BlockSpec((1, 4, Q), lambda n, p: (n, 0, 0))],
        scratch_shapes=[pltpu.VMEM((hid, 1), jnp.float32)],
        compiler_params=pltpu.CompilerParams(
            dimension_semantics=("parallel", "arbitrary"),
            vmem_limit_bytes=vmem_limit),
    )(x, pool_mask, w_eff, b_eff, q_t, wcls_t, bcls_t, wbox_t, bbox_t)


# ----------------------------------- pipeline wrapper --------------------------------------

@jax.jit
def object_detection_pipeline(raw_img, params):
    N, C, H, W = raw_img.shape
    HW = H * W

    wy, by = params["wy"], params["by"]            # (YC, C), (YC, 1)
    wd, bd = params["wd"], params["bd"]            # (HID, C), (HID, 1)
    yc, hid = wy.shape[0], wd.shape[0]
    hid_off = ((yc + 7) // 8) * 8                  # sublane-align the backbone rows
    pad_rows = hid_off - yc
    w_all = jnp.concatenate([wy, jnp.zeros((pad_rows, C), wy.dtype), wd], axis=0)
    b_all = jnp.concatenate([by, jnp.zeros((pad_rows, 1), by.dtype), bd], axis=0)
    wtot = w_all.shape[0]

    # Fold the per-channel preprocess affine into the fused 1x1-conv weights:
    #   W @ (x*scale + shift) + b  ==  (W * scale^T) @ x + (W @ shift + b)
    scale, shift = params["scale"], params["shift"]            # (C, 1) each
    w_eff = w_all * scale.reshape(1, C)
    b_eff = w_all @ shift + b_all

    # spatial (lane) tile: as large as practical, multiple of 128; pad the tail tile.
    TP_CAP = 16384
    if HW >= TP_CAP:
        tp = TP_CAP
        hw_pad = -(-HW // tp) * tp
    else:
        hw_pad = ((HW + 127) // 128) * 128
        tp = hw_pad

    x = raw_img.reshape(N, C, HW)
    if hw_pad != HW:
        x = jnp.pad(x, ((0, 0), (0, 0), (0, hw_pad - HW)))
    # 0/1 column selecting the valid (non-padded) pixels; used as an MXU matvec reducer.
    pool_mask = (jnp.arange(hw_pad) < HW).astype(jnp.float32).reshape(hw_pad, 1)

    # VMEM budget derived from the actual tile sizes (double-buffered ins/outs + temps),
    # clamped so it always fits v7x's 64 MiB physical VMEM with headroom.
    BYTES = 4
    Q = params["queriesT"].shape[1]
    ncls = params["wclsT"].shape[0]
    tile_io = (C * tp + yc * tp + tp) * BYTES                  # x + yolo + mask per buffer
    temps = (wtot + hid) * tp * BYTES                          # 'out' + 'feat' intermediates
    consts = (wtot * (C + 1) + hid * (Q + 1) + (ncls + 4) * (hid + 1)) * BYTES * 2
    vmem_need = 2 * tile_io + temps + consts + (2 << 20)
    vmem_limit = int(min(max(2 * vmem_need, 32 * 1024 * 1024), 56 * 1024 * 1024))

    yolo_p, logits_t, boxes_t = run_detection_kernel(
        x, pool_mask, w_eff, b_eff,
        params["queriesT"], params["wclsT"], params["bclsT"],
        params["wboxT"], params["bboxT"],
        yc=yc, hid_off=hid_off, hw_valid=HW, tp=tp, vmem_limit=vmem_limit)

    yolo_out = yolo_p[:, :, :HW].reshape(N, yc, H, W)     # already NCHW, no transpose
    detr_out = {"pred_logits": jnp.transpose(logits_t, (0, 2, 1)),   # (N, Q, NCLS)
                "pred_boxes": jnp.transpose(boxes_t, (0, 2, 1))}     # (N, Q, 4)
    return yolo_out, detr_out


# ----------------------------------- parameter builder -------------------------------------

def make_params(key, cin=3, hidden=32, num_anchors=3, num_det_classes=4,
                num_queries=8, num_detr_classes=4):
    ks = jax.random.split(key, 7)
    yc = num_anchors * (5 + num_det_classes)       # 27
    ncls = num_detr_classes + 1                    # +1 no-object class (DETR convention)
    mean = jnp.array([0.485, 0.456, 0.406], jnp.float32).reshape(cin, 1)
    std = jnp.array([0.229, 0.224, 0.225], jnp.float32).reshape(cin, 1)
    return {
        "scale": 1.0 / (255.0 * std),                                            # (C, 1)
        "shift": -mean / std,                                                    # (C, 1)
        "wy": jax.random.normal(ks[0], (yc, cin), jnp.float32) * 0.1,            # YOLO head
        "by": jax.random.normal(ks[1], (yc, 1), jnp.float32) * 0.01,
        "wd": jax.random.normal(ks[2], (hidden, cin), jnp.float32) * 0.1,        # DETR backbone
        "bd": jax.random.normal(ks[3], (hidden, 1), jnp.float32) * 0.01,
        "queriesT": jax.random.normal(ks[4], (hidden, num_queries), jnp.float32) * 0.1,
        "wclsT": jax.random.normal(ks[5], (ncls, hidden), jnp.float32) * 0.1,
        "bclsT": jnp.zeros((ncls, 1), jnp.float32),
        "wboxT": jax.random.normal(ks[6], (4, hidden), jnp.float32) * 0.1,
        "bboxT": jnp.zeros((4, 1), jnp.float32),
    }


if __name__ == "__main__":
    key = jax.random.PRNGKey(0)
    k_img, _ = jax.random.split(key)
    # small raw image batch: (batch=2, channels=3, H=16, W=16), pixel values in [0, 255)
    raw_img = jax.random.uniform(k_img, (2, 3, 16, 16), jnp.float32) * 255.0
    params = make_params(jax.random.PRNGKey(42))

    yolo_out, detr_out = object_detection_pipeline(raw_img, params)
    jax.block_until_ready((yolo_out, detr_out))

    assert yolo_out.shape == (2, 27, 16, 16)
    assert detr_out["pred_logits"].shape == (2, 8, 5)
    assert detr_out["pred_boxes"].shape == (2, 8, 4)
    assert bool(jnp.all(jnp.isfinite(yolo_out)))
    assert bool(jnp.all(jnp.isfinite(detr_out["pred_logits"])))
    assert bool(jnp.all((detr_out["pred_boxes"] >= 0) & (detr_out["pred_boxes"] <= 1)))
    print("KERNEL_OK")
</pallas_src>

<mosaic_0001>
module attributes {stable_mosaic.version = 11 : i64} {
  func.func @kernel(%arg0: i32, %arg1: i32, %arg2: memref<1x3x256xf32, #tpu.memory_space<vmem>>, %arg3: memref<256x1xf32, #tpu.memory_space<vmem>>, %arg4: memref<64x3xf32, #tpu.memory_space<vmem>>, %arg5: memref<64x1xf32, #tpu.memory_space<vmem>>, %arg6: memref<32x8xf32, #tpu.memory_space<vmem>>, %arg7: memref<5x32xf32, #tpu.memory_space<vmem>>, %arg8: memref<5x1xf32, #tpu.memory_space<vmem>>, %arg9: memref<4x32xf32, #tpu.memory_space<vmem>>, %arg10: memref<4x1xf32, #tpu.memory_space<vmem>>, %arg11: memref<1x27x256xf32, #tpu.memory_space<vmem>>, %arg12: memref<1x5x8xf32, #tpu.memory_space<vmem>>, %arg13: memref<1x4x8xf32, #tpu.memory_space<vmem>>, %arg14: memref<32x1xf32, #tpu.memory_space<vmem>>) attributes {dimension_semantics = [#tpu.dimension_semantics<parallel>, #tpu.dimension_semantics<arbitrary>], iteration_bounds = array<i64: 2, 1>, scalar_prefetch = 0 : i64, scratch_operands = 1 : i64, tpu.core_type = #tpu.core_type<tc>, window_params = [{transform_indices = @transform_0, window_bounds = array<i64: 1, 3, 256>}, {transform_indices = @transform_1, window_bounds = array<i64: 256, 1>}, {pipeline_mode = #tpu.pipeline_mode<synchronous>, transform_indices = @transform_2, window_bounds = array<i64: 64, 3>}, {pipeline_mode = #tpu.pipeline_mode<synchronous>, transform_indices = @transform_3, window_bounds = array<i64: 64, 1>}, {pipeline_mode = #tpu.pipeline_mode<synchronous>, transform_indices = @transform_4, window_bounds = array<i64: 32, 8>}, {pipeline_mode = #tpu.pipeline_mode<synchronous>, transform_indices = @transform_5, window_bounds = array<i64: 5, 32>}, {pipeline_mode = #tpu.pipeline_mode<synchronous>, transform_indices = @transform_6, window_bounds = array<i64: 5, 1>}, {pipeline_mode = #tpu.pipeline_mode<synchronous>, transform_indices = @transform_7, window_bounds = array<i64: 4, 32>}, {pipeline_mode = #tpu.pipeline_mode<synchronous>, transform_indices = @transform_8, window_bounds = array<i64: 4, 1>}, {transform_indices = @transform_9, window_bounds = array<i64: 1, 27, 256>}, {transform_indices = @transform_10, window_bounds = array<i64: 1, 5, 8>}, {transform_indices = @transform_11, window_bounds = array<i64: 1, 4, 8>}]} {
    %c0_i32 = arith.constant 0 : i32
    %0 = arith.cmpi eq, %arg1, %c0_i32 : i32
    %1 = arith.extui %0 : i1 to i32
    %c0_i32_0 = arith.constant 0 : i32
    %2 = arith.cmpi ne, %1, %c0_i32_0 : i32
    scf.if %2 {
      %cst_20 = arith.constant 0.000000e+00 : f32
      %25 = vector.broadcast %cst_20 : f32 to vector<32x1xf32>
      %c0_21 = arith.constant 0 : index
      %c0_22 = arith.constant 0 : index
      %26 = vector.load %arg14[%c0_21, %c0_22] : memref<32x1xf32, #tpu.memory_space<vmem>>, vector<32x1xf32>
      tpu.vector_store %arg14[%c0_21, %c0_22], %25 {strides = array<i32>} : memref<32x1xf32, #tpu.memory_space<vmem>>, vector<32x1xf32>,
    } else {
    }
    %c0 = arith.constant 0 : index
    %c0_1 = arith.constant 0 : index
    %3 = vector.load %arg4[%c0, %c0_1] : memref<64x3xf32, #tpu.memory_space<vmem>>, vector<64x3xf32>
    %c0_2 = arith.constant 0 : index
    %c0_3 = arith.constant 0 : index
    %c0_4 = arith.constant 0 : index
    %4 = vector.load %arg2[%c0_2, %c0_3, %c0_4] : memref<1x3x256xf32, #tpu.memory_space<vmem>>, vector<1x3x256xf32>
    %5 = vector.shape_cast %4 : vector<1x3x256xf32> to vector<3x256xf32>
    %cst = arith.constant dense<0.000000e+00> : vector<64x256xf32>
    %6 = tpu.matmul %3, %5, %cst {dimension_numbers = #tpu.dot_dimension_numbers<[1], [0], [0], [1], [0, 0, 1, 1], [], []>} : vector<64x3xf32>, vector<3x256xf32>, vector<64x256xf32> -> vector<64x256xf32>
    %c0_5 = arith.constant 0 : index
    %c0_6 = arith.constant 0 : index
    %7 = vector.load %arg5[%c0_5, %c0_6] : memref<64x1xf32, #tpu.memory_space<vmem>>, vector<64x1xf32>
    %8 = vector.broadcast %7 : vector<64x1xf32> to vector<64x256xf32>
    %9 = arith.addf %6, %8 : vector<64x256xf32>
    %10 = vector.extract_strided_slice %9 {offsets = [0, 0], sizes = [27, 256], strides = [1, 1]} : vector<64x256xf32> to vector<27x256xf32>
    %c0_7 = arith.constant 0 : index
    %c0_8 = arith.constant 0 : index
    %c0_9 = arith.constant 0 : index
    %11 = vector.load %arg11[%c0_7, %c0_8, %c0_9] : memref<1x27x256xf32, #tpu.memory_space<vmem>>, vector<1x27x256xf32>
    %12 = vector.shape_cast %11 : vector<1x27x256xf32> to vector<27x256xf32>
    %13 = vector.shape_cast %10 : vector<27x256xf32> to vector<1x27x256xf32>
    tpu.vector_store %arg11[%c0_7, %c0_8, %c0_9], %13 {strides = array<i32>} : memref<1x27x256xf32, #tpu.memory_space<vmem>>, vector<1x27x256xf32>,
    %14 = vector.extract_strided_slice %9 {offsets = [32, 0], sizes = [32, 256], strides = [1, 1]} : vector<64x256xf32> to vector<32x256xf32>
    %cst_10 = arith.constant 0.000000e+00 : f32
    %15 = vector.broadcast %cst_10 : f32 to vector<32x256xf32>
    %16 = arith.maximumf %14, %15 : vector<32x256xf32>
    %c0_11 = arith.constant 0 : index
    %c0_12 = arith.constant 0 : index
    %17 = vector.load %arg14[%c0_11, %c0_12] : memref<32x1xf32, #tpu.memory_space<vmem>>, vector<32x1xf32>
    %c0_13 = arith.constant 0 : index
    %c0_14 = arith.constant 0 : index
    %18 = vector.load %arg3[%c0_13, %c0_14] : memref<256x1xf32, #tpu.memory_space<vmem>>, vector<256x1xf32>
    %cst_15 = arith.constant dense<0.000000e+00> : vector<32x1xf32>
    %19 = tpu.matmul %16, %18, %cst_15 {dimension_numbers = #tpu.dot_dimension_numbers<[1], [0], [0], [1], [0, 0, 1, 1], [], []>} : vector<32x256xf32>, vector<256x1xf32>, vector<32x1xf32> -> vector<32x1xf32>
    %20 = arith.addf %17, %19 : vector<32x1xf32>
    %c0_16 = arith.constant 0 : index
    %c0_17 = arith.constant 0 : index
    %21 = vector.load %arg14[%c0_16, %c0_17] : memref<32x1xf32, #tpu.memory_space<vmem>>, vector<32x1xf32>
    tpu.vector_store %arg14[%c0_16, %c0_17], %20 {strides = array<i32>} : memref<32x1xf32, #tpu.memory_space<vmem>>, vector<32x1xf32>,
    %c0_i32_18 = arith.constant 0 : i32
    %22 = arith.cmpi eq, %arg1, %c0_i32_18 : i32
    %23 = arith.extui %22 : i1 to i32
    %c0_i32_19 = arith.constant 0 : i32
    %24 = arith.cmpi ne, %23, %c0_i32_19 : i32
    scf.if %24 {
      %c0_20 = arith.constant 0 : index
      %c0_21 = arith.constant 0 : index
      %25 = vector.load %arg14[%c0_20, %c0_21] : memref<32x1xf32, #tpu.memory_space<vmem>>, vector<32x1xf32>
      %cst_22 = arith.constant 3.906250e-03 : f32
      %26 = vector.broadcast %cst_22 : f32 to vector<32x1xf32>
      %27 = arith.mulf %25, %26 : vector<32x1xf32>
      %c0_23 = arith.constant 0 : index
      %c0_24 = arith.constant 0 : index
      %28 = vector.load %arg6[%c0_23, %c0_24] : memref<32x8xf32, #tpu.memory_space<vmem>>, vector<32x8xf32>
      %29 = vector.broadcast %27 : vector<32x1xf32> to vector<32x8xf32>
      %30 = arith.addf %28, %29 : vector<32x8xf32>
      %c0_25 = arith.constant 0 : index
      %c0_26 = arith.constant 0 : index
      %31 = vector.load %arg7[%c0_25, %c0_26] : memref<5x32xf32, #tpu.memory_space<vmem>>, vector<5x32xf32>
      %cst_27 = arith.constant dense<0.000000e+00> : vector<5x8xf32>
      %32 = tpu.matmul %31, %30, %cst_27 {dimension_numbers = #tpu.dot_dimension_numbers<[1], [0], [0], [1], [0, 0, 1, 1], [], []>} : vector<5x32xf32>, vector<32x8xf32>, vector<5x8xf32> -> vector<5x8xf32>
      %c0_28 = arith.constant 0 : index
      %c0_29 = arith.constant 0 : index
      %33 = vector.load %arg8[%c0_28, %c0_29] : memref<5x1xf32, #tpu.memory_space<vmem>>, vector<5x1xf32>
      %34 = vector.broadcast %33 : vector<5x1xf32> to vector<5x8xf32>
      %35 = arith.addf %32, %34 : vector<5x8xf32>
      %c0_30 = arith.constant 0 : index
      %c0_31 = arith.constant 0 : index
      %c0_32 = arith.constant 0 : index
      %36 = vector.load %arg12[%c0_30, %c0_31, %c0_32] : memref<1x5x8xf32, #tpu.memory_space<vmem>>, vector<1x5x8xf32>
      %37 = vector.shape_cast %36 : vector<1x5x8xf32> to vector<5x8xf32>
      %38 = vector.shape_cast %35 : vector<5x8xf32> to vector<1x5x8xf32>
      tpu.vector_store %arg12[%c0_30, %c0_31, %c0_32], %38 {strides = array<i32>} : memref<1x5x8xf32, #tpu.memory_space<vmem>>, vector<1x5x8xf32>,
      %c0_33 = arith.constant 0 : index
      %c0_34 = arith.constant 0 : index
      %39 = vector.load %arg9[%c0_33, %c0_34] : memref<4x32xf32, #tpu.memory_space<vmem>>, vector<4x32xf32>
      %cst_35 = arith.constant dense<0.000000e+00> : vector<4x8xf32>
      %40 = tpu.matmul %39, %30, %cst_35 {dimension_numbers = #tpu.dot_dimension_numbers<[1], [0], [0], [1], [0, 0, 1, 1], [], []>} : vector<4x32xf32>, vector<32x8xf32>, vector<4x8xf32> -> vector<4x8xf32>
      %c0_36 = arith.constant 0 : index
      %c0_37 = arith.constant 0 : index
      %41 = vector.load %arg10[%c0_36, %c0_37] : memref<4x1xf32, #tpu.memory_space<vmem>>, vector<4x1xf32>
      %42 = vector.broadcast %41 : vector<4x1xf32> to vector<4x8xf32>
      %43 = arith.addf %40, %42 : vector<4x8xf32>
      %44 = arith.negf %43 : vector<4x8xf32>
      %45 = math.exp %44 : vector<4x8xf32>
      %cst_38 = arith.constant 1.000000e+00 : f32
      %46 = vector.broadcast %cst_38 : f32 to vector<4x8xf32>
      %47 = arith.addf %46, %45 : vector<4x8xf32>
      %48 = arith.divf %46, %47 : vector<4x8xf32>
      %c0_39 = arith.constant 0 : index
      %c0_40 = arith.constant 0 : index
      %c0_41 = arith.constant 0 : index
      %49 = vector.load %arg13[%c0_39, %c0_40, %c0_41] : memref<1x4x8xf32, #tpu.memory_space<vmem>>, vector<1x4x8xf32>
      %50 = vector.shape_cast %49 : vector<1x4x8xf32> to vector<4x8xf32>
      %51 = vector.shape_cast %48 : vector<4x8xf32> to vector<1x4x8xf32>
      tpu.vector_store %arg13[%c0_39, %c0_40, %c0_41], %51 {strides = array<i32>} : memref<1x4x8xf32, #tpu.memory_space<vmem>>, vector<1x4x8xf32>,
    } else {
    }
    return
  }
  func.func @transform_0(%arg0: i32, %arg1: i32) -> (i32, i32, i32) {
    %c0_i32 = arith.constant 0 : i32
    %c0_i32_0 = arith.constant 0 : i32
    return %arg0, %c0_i32, %arg1 : i32, i32, i32
  }
  func.func @transform_1(%arg0: i32, %arg1: i32) -> (i32, i32) {
    %c0_i32 = arith.constant 0 : i32
    %c0_i32_0 = arith.constant 0 : i32
    return %arg1, %c0_i32 : i32, i32
  }
  func.func @transform_2(%arg0: i32, %arg1: i32) -> (i32, i32) {
    %c0_i32 = arith.constant 0 : i32
    %c0_i32_0 = arith.constant 0 : i32
    %c0_i32_1 = arith.constant 0 : i32
    return %c0_i32, %c0_i32_0 : i32, i32
  }
  func.func @transform_3(%arg0: i32, %arg1: i32) -> (i32, i32) {
    %c0_i32 = arith.constant 0 : i32
    %c0_i32_0 = arith.constant 0 : i32
    %c0_i32_1 = arith.constant 0 : i32
    return %c0_i32, %c0_i32_0 : i32, i32
  }
  func.func @transform_4(%arg0: i32, %arg1: i32) -> (i32, i32) {
    %c0_i32 = arith.constant 0 : i32
    %c0_i32_0 = arith.constant 0 : i32
    %c0_i32_1 = arith.constant 0 : i32
    return %c0_i32, %c0_i32_0 : i32, i32
  }
  func.func @transform_5(%arg0: i32, %arg1: i32) -> (i32, i32) {
    %c0_i32 = arith.constant 0 : i32
    %c0_i32_0 = arith.constant 0 : i32
    %c0_i32_1 = arith.constant 0 : i32
    return %c0_i32, %c0_i32_0 : i32, i32
  }
  func.func @transform_6(%arg0: i32, %arg1: i32) -> (i32, i32) {
    %c0_i32 = arith.constant 0 : i32
    %c0_i32_0 = arith.constant 0 : i32
    %c0_i32_1 = arith.constant 0 : i32
    return %c0_i32, %c0_i32_0 : i32, i32
  }
  func.func @transform_7(%arg0: i32, %arg1: i32) -> (i32, i32) {
    %c0_i32 = arith.constant 0 : i32
    %c0_i32_0 = arith.constant 0 : i32
    %c0_i32_1 = arith.constant 0 : i32
    return %c0_i32, %c0_i32_0 : i32, i32
  }
  func.func @transform_8(%arg0: i32, %arg1: i32) -> (i32, i32) {
    %c0_i32 = arith.constant 0 : i32
    %c0_i32_0 = arith.constant 0 : i32
    %c0_i32_1 = arith.constant 0 : i32
    return %c0_i32, %c0_i32_0 : i32, i32
  }
  func.func @transform_9(%arg0: i32, %arg1: i32) -> (i32, i32, i32) {
    %c0_i32 = arith.constant 0 : i32
    %c0_i32_0 = arith.constant 0 : i32
    return %arg0, %c0_i32, %arg1 : i32, i32, i32
  }
  func.func @transform_10(%arg0: i32, %arg1: i32) -> (i32, i32, i32) {
    %c0_i32 = arith.constant 0 : i32
    %c0_i32_0 = arith.constant 0 : i32
    %c0_i32_1 = arith.constant 0 : i32
    return %arg0, %c0_i32, %c0_i32_0 : i32, i32, i32
  }
  func.func @transform_11(%arg0: i32, %arg1: i32) -> (i32, i32, i32) {
    %c0_i32 = arith.constant 0 : i32
    %c0_i32_0 = arith.constant 0 : i32
    %c0_i32_1 = arith.constant 0 : i32
    return %arg0, %c0_i32, %c0_i32_0 : i32, i32, i32
  }
}

</mosaic_0001>

<bundles_post_ra>
// kernel: object_detection_pipeline.1
= control target key start
LH: loop header
LB: loop body
LE: loop exit
PB: predicated region body
PF: predicated region fallthrough
CT: control target
= control target key end

     0   :  { %s1660_s0 = inlined_call_operand.vmem [shape: f32[2,3,256], index: 0, kind: input, shape index: {}]   ;;  %s1661_s1 = inlined_call_operand.vmem [shape: f32[256,1], index: 1, kind: input, shape index: {}]   ;;  %s1662_s2 = inlined_call_operand.vmem [shape: f32[64,3], index: 2, kind: input, shape index: {}]   ;;  %s1663_s3 = inlined_call_operand.vmem [shape: f32[64,1], index: 3, kind: input, shape index: {}]   ;;  %s1664_s4 = inlined_call_operand.vmem [shape: f32[32,8], index: 4, kind: input, shape index: {}]   ;;  %s1665_s5 = inlined_call_operand.vmem [shape: f32[5,32], index: 5, kind: input, shape index: {}]   ;;  %s1666_s6 = inlined_call_operand.vmem [shape: f32[5,1], index: 6, kind: input, shape index: {}]   ;;  %s1667_s7 = inlined_call_operand.vmem [shape: f32[4,32], index: 7, kind: input, shape index: {}]   ;;  %s1668_s8 = inlined_call_operand.vmem [shape: f32[4,1], index: 8, kind: input, shape index: {}]   ;;  %s1669_s9 = inlined_call_operand.vmem [shape: f32[2,27,256], index: 9, kind: output, shape index: {0}]   ;;  %s1670_s10 = inlined_call_operand.vmem [shape: f32[2,5,8], index: 10, kind: output, shape index: {1}]   ;;  %s1671_s11 = inlined_call_operand.hbm [shape: f32[2,4,8], index: 11, kind: output, shape index: {2}]  }
   0x1   :  { %1673 = sst [smem:[#allocation6_spill]] %s1660_s0 }
   0x2   :  { %1674 = sst [smem:[#allocation7_spill]] %s1662_s2 }
   0x3   :  { %17 = vsyncpa [#allocation4], 0 }
   0x4   :  { %19 = vsyncpa [#allocation4 + $0x1], 0  ;;  %s1323_s17 = smov 0   ;;  %s1325_s18 = smov 0  }
   0x5   :  { %s1327_s19 = smov 0   ;;  %s1329_s20 = smov 0  }
   0x6   :  { %s1331_s21 = smov 0   ;;  %s1333_s22 = smov 0  }
   0x7 LB: > { %s1078_s23 = sadd.s32 4294967295, %s1259_s22   ;;  %s1079_s24 = sadd.s32 4294967294, %s1259_s22   ;;  %s1259_s22 = sphi %s1333_s22, %s25_s22   ;;  %s1255_s21 = sphi %s1331_s21, %s1684_s21   ;;  %s1251_s20 = sphi %s1329_s20, %s1683_s20   ;;  %s1247_s19 = sphi %s1327_s19, %s1682_s19   ;;  %s1243_s18 = sphi %s1325_s18, %s1681_s18   ;;  %s1239_s17 = sphi %s1323_s17, %s1680_s17  }
   0x8   : > { %s37_s25 = sadd.s32 1, %s1255_s21  ;;  %s299_s26 = sadd.s32 1, %s1247_s19 }
   0x9   : > { %p39_p0 = scmp.ge.s32.totalorder %s37_s25, 2  ;;  %p309_p1 = scmp.ne.s32.totalorder %s1247_s19, %s1243_s18 }
   0xa   : > { %p310_p2 = scmp.eq.s32.totalorder %s1078_s23, 1  ;;  %p315_p3 = scmp.ne.s32.totalorder %s1243_s18, %s1239_s17 }
   0xb   : > { %s1686_s25 = smov (%p39_p0, %s37_s25), 0  ;;  %p316_p5 = scmp.eq.s32.totalorder %s1079_s24, 1 }
   0xc   : > { %p1363_p4 = por %p310_p2, %p309_p1  ;;  %s296_s28 = ssub.s32 %s1255_s21, %s1686_s25 }
   0xd   : > { %p1083_p6 = scmp.ge.s32.totalorder %s1259_s22, 1  ;;  %p297_p7 = scmp.eq.s32.totalorder %s296_s28, 0 }
   0xe   : > { %p1370_p8 = por %p316_p5, %p315_p3  ;;  %p377_p9 = scmp.lt.s32.totalorder %s1259_s22, 3 }
   0xf   : > { %s1376_s30 = scalar_select %p297_p7, %s1247_s19, %s299_s26  }
  0x10   : > { %p378_p10 = pnand %p1083_p6, %p377_p9 }
  0x11   : > { %p440_p11 = scmp.lt.s32.totalorder (!%p378_p10), %s1251_s20, 1  ;;  %s1677_s0 = sld [smem:[#allocation6_spill]] (!%p378_p10) }
  0x12   : > { %381 = sbr.rel (%p378_p10) target bundleno = 641 (0x281), region = 56  ;;  %s1678_s2 = sld [smem:[#allocation7_spill]] (!%p378_p10) }
  0x13   : > { %s436_s23 = sand.u32 (!%p378_p10), 1, %s1243_s18  }
  0x17   : > { %s1380_s12 = scalar_select %p440_p11, %s1251_s20, 1  ;;  %vm564_vm0 = vcmask 1042432   ;;  %vm539_vm1 = vcmask 23552   ;;  %v491_v4 = vld [vmem:[%s1663_s3 + $0x20] sm:$0xff]  ;;  %v1261_v5 = vmov 0   ;;  %v492_v7 = vld [vmem:[%s1663_s3 + $0x28] sm:$0xff] }
  0x18   : > { %v478_v1 = vld [vmem:[%s1678_s2] sm:$0xff]  ;;  %1174 = vset.pattern.permute.xlu0 %v1261_v5  ;;  %1175 = vset.pattern.permute.xlu1 %v1261_v5  ;;  %v479_v6 = vld [vmem:[%s1678_s2 + $0x8] sm:$0xff]  ;;  %v480_v8 = vld [vmem:[%s1678_s2 + $0x10] sm:$0xff]  ;;  %vm473_vm2 = vcmask 7168   ;;  %vm816_vm3 = vcmask 261120   ;;  %vm840_vm4 = vcmask 61440  }
  0x19   : > { %s1672_s13 = sshll.u32 %s1380_s12, 3  ;;  %517 = vperm.xlu0 %1174, %v491_v4   ;;  %1176 = vset.pattern.permute.xlu2 %v1261_v5  ;;  %v493_v9 = vld [vmem:[%s1663_s3 + $0x30] sm:$0xff]  ;;  %v481_v10 = vld [vmem:[%s1678_s2 + $0x18] sm:$0xff]  ;;  %v482_v12 = vld [vmem:[%s1678_s2 + $0x20] sm:$0xff]  ;;  %s1679_s28 = sshll.u32 %s1380_s12, 3  ;;  %vm891_vm8 = vcmask 60416  }
  0x1a   : > { %s447_s16 = scalar_lea.vmem %s1677_s0, %s1672_s13  ;;  %527 = vperm.xlu1 %1175, %v493_v9   ;;  %v494_v11 = vld [vmem:[%s1663_s3 + $0x38] sm:$0xff]  ;;  %v483_v13 = vld [vmem:[%s1678_s2 + $0x28] sm:$0xff]  ;;  %v484_v14 = vld [vmem:[%s1678_s2 + $0x30] sm:$0xff]  ;;  %s1116_s0 = sshll.u32 %s1380_s12, 6 }
  0x1b   : > { %v486_v0 = vld [vmem:[%s447_s16] sm:$0x77]  ;;  %v485_v15 = vld [vmem:[%s1678_s2 + $0x38] sm:$0xff]  ;;  %v685_v18 = vld [vmem:[%s1661_s1 + $0x70] sm:$0xff]  ;;  %s1588_s13 = scalar_lea.vmem %s1669_s9, %s1116_s0  ;;  %s468_s16 = scalar_lea.vmem %s1670_s10, %s1679_s28 }
  0x1c   : > { %536 = vst [vmem:[#allocation1] ss:$2 sm:$0xff] %v486_v0  ;;  %v686_v16 = vld [vmem:[%s1661_s1 + $0x78] sm:$0xff]  ;;  %v701_v19 = vld [vmem:[%s1661_s1 + $0xf0] sm:$0xff]  ;;  %v684_v20 = vld [vmem:[%s1661_s1 + $0x68] sm:$0xff]  ;;  %s1112_s12 = sshll.u32 %s1251_s20, 2 }
  0x1d   : > { %v702_v17 = vld [vmem:[%s1661_s1 + $0xf8] sm:$0xff]  ;;  %703 = vmatpush.msra.mxu2 %v686_v16  ;;  %v700_v21 = vld [vmem:[%s1661_s1 + $0xe8] sm:$0xff]  ;;  %v683_v22 = vld [vmem:[%s1661_s1 + $0x60] sm:$0xff]  ;;  %s924_s24 = scalar_lea.hbm %s1671_s11, %s1112_s12  ;;  %s907_s20 = scalar_lea.sflag [#allocation4], %s436_s23 }
  0x1e   : > { %732 = vmatpush.msra.mxu3 %v702_v17  ;;  %v699_v23 = vld [vmem:[%s1661_s1 + $0xe0] sm:$0xff]  ;;  %v682_v24 = vld [vmem:[%s1661_s1 + $0x58] sm:$0xff]  ;;  %v681_v26 = vld [vmem:[%s1661_s1 + $0x50] sm:$0xff]  ;;  %s928_s14 = sshll.u32 %s924_s24, 4  ;;  %s1201_s0 = scalar_lea.hbm %s1671_s11, 8  ;;  %s929_s14 = int_to_ptr.hbm [resolvable:$true] %s928_s14 }
  0x1f   : > { %704 = vmatpush.msra.mxu2 %v685_v18  ;;  %v698_v25 = vld [vmem:[%s1661_s1 + $0xd8] sm:$0xff]  ;;  %v697_v27 = vld [vmem:[%s1661_s1 + $0xd0] sm:$0xff]  ;;  %v680_v28 = vld [vmem:[%s1661_s1 + $0x48] sm:$0xff]  ;;  %s1195_s15 = sshra.s32 %s929_s14, 4  ;;  %s1196_s15 = int_to_ptr.hbm [resolvable:$true] %s1195_s15 }
  0x20   : > { %733 = vmatpush.msra.mxu3 %v701_v19  ;;  %v696_v29 = vld [vmem:[%s1661_s1 + $0xc8] sm:$0xff]  ;;  %v679_v30 = vld [vmem:[%s1661_s1 + $0x40] sm:$0xff]  ;;  %v678_v32 = vld [vmem:[%s1661_s1 + $0x38] sm:$0xff]  ;;  %p1202_p1 = scmp.lt.s32.totalorder %s1196_s15, %s1671_s11 }
  0x21   : > { %522 = vperm.xlu0 %1174, %v492_v7   ;;  %705 = vmatpush.msra.mxu2 %v684_v20  ;;  %v695_v31 = vld [vmem:[%s1661_s1 + $0xc0] sm:$0xff]  ;;  %v694_v33 = vld [vmem:[%s1661_s1 + $0xb8] sm:$0xff]  ;;  %v677_v34 = vld [vmem:[%s1661_s1 + $0x30] sm:$0xff]  ;;  %v1262_v20 = vmov 0.0  }
  0x22   : > { %532 = vperm.xlu1 %1175, %v494_v11   ;;  %734 = vmatpush.msra.mxu3 %v700_v21  ;;  %v693_v35 = vld [vmem:[%s1661_s1 + $0xb0] sm:$0xff]  ;;  %v676_v36 = vld [vmem:[%s1661_s1 + $0x28] sm:$0xff]  ;;  %v675_v38 = vld [vmem:[%s1661_s1 + $0x20] sm:$0xff]  ;;  %474 = vst.msk [vmem:[#allocation2] sm:$0xff] %vm473_vm2, %v1262_v20 }
  0x23   : > { %v537_v2 = vld.sshfl [vmem:[#allocation1] sm:$0xff pattern:$0x75316420]  ;;  %v538_v3 = vld.sshfl [vmem:[#allocation1 + $0x8] sm:$0xff pattern:$0x75316420]  ;;  %706 = vmatpush.msra.mxu2 %v683_v22 }
  0x24   : > { %1090 = vmatpush.msk.msra.mxu0 %vm564_vm0, %v537_v2  ;;  %1099 = vmatpush.msk.msra.mxu1 %vm564_vm0, %v538_v3  ;;  %v692_v37 = vld [vmem:[%s1661_s1 + $0xa8] sm:$0xff]  ;;  %v691_v39 = vld [vmem:[%s1661_s1 + $0xa0] sm:$0xff]  ;;  %v674_v40 = vld [vmem:[%s1661_s1 + $0x18] sm:$0xff]  ;;  %475 = vst.msk [vmem:[#allocation2 + $0x8] sm:$0xff] %vm473_vm2, %v1262_v20 }
  0x25   : > { %1091 = vmatmul.msk.f32.vlgmr.msra.gmra.mxu0 %vm539_vm1, %v478_v1  ;;  %1100 = vmatmul.msk.f32.vlgmr.msra.gmra.mxu1 %vm539_vm1, %v478_v1  ;;  %v690_v41 = vld [vmem:[%s1661_s1 + $0x98] sm:$0xff]  ;;  %v673_v42 = vld [vmem:[%s1661_s1 + $0x10] sm:$0xff]  ;;  %v672_v46 = vld [vmem:[%s1661_s1 + $0x8] sm:$0xff]  ;;  %476 = vst.msk [vmem:[#allocation2 + $0x10] sm:$0xff] %vm473_vm2, %v1262_v20 }
  0x26   : > { %735 = vmatpush.msra.mxu3 %v699_v23  ;;  %707 = vmatpush.msra.mxu2 %v682_v24  ;;  %v689_v43 = vld [vmem:[%s1661_s1 + $0x90] sm:$0xff]  ;;  %v688_v47 = vld [vmem:[%s1661_s1 + $0x88] sm:$0xff]  ;;  %v671_v48 = vld [vmem:[%s1661_s1] sm:$0xff]  ;;  %477 = vst.msk [vmem:[#allocation2 + $0x18] sm:$0xff] %vm473_vm2, %v1262_v20 }
  0x27   : > { %v687_v49 = vld [vmem:[%s1661_s1 + $0x80] sm:$0xff] }
  0x28   : > { %736 = vmatpush.msra.mxu3 %v698_v25  ;;  %708 = vmatpush.msra.mxu2 %v681_v26 }
  0x29   : > { %v667_v22 = vld [vmem:[#allocation2] sm:$0xff] }
  0x2a   : > { %737 = vmatpush.msra.mxu3 %v697_v27  ;;  %709 = vmatpush.msra.mxu2 %v680_v28 }
  0x2b   : > { %v668_v27 = vld [vmem:[#allocation2 + $0x8] sm:$0xff] }
  0x2c   : > { %738 = vmatpush.msra.mxu3 %v696_v29  ;;  %710 = vmatpush.msra.mxu2 %v679_v30 }
  0x2d   : > { %1092 = vmatmul.msk.f32.gmra.mxu0 %vm539_vm1, %v479_v6  ;;  %1101 = vmatmul.msk.f32.gmra.mxu1 %vm539_vm1, %v479_v6 }
  0x2e   : > { %739 = vmatpush.msra.mxu3 %v695_v31  ;;  %711 = vmatpush.msra.mxu2 %v678_v32 }
  0x30   : > { %740 = vmatpush.msra.mxu3 %v694_v33  ;;  %712 = vmatpush.msra.mxu2 %v677_v34  ;;  %v669_v34 = vld [vmem:[#allocation2 + $0x10] sm:$0xff] }
  0x32   : > { %741 = vmatpush.msra.mxu3 %v693_v35  ;;  %713 = vmatpush.msra.mxu2 %v676_v36 }
  0x34   : > { %742 = vmatpush.msra.mxu3 %v692_v37  ;;  %714 = vmatpush.msra.mxu2 %v675_v38  ;;  %v488_v38 = vld [vmem:[%s1663_s3 + $0x8] sm:$0xff] }
  0x35   : > { %1093 = vmatmul.msk.f32.gmra.mxu0 %vm539_vm1, %v480_v8  ;;  %1102 = vmatmul.msk.f32.gmra.mxu1 %vm539_vm1, %v480_v8 }
  0x36   : > { %743 = vmatpush.msra.mxu3 %v691_v39  ;;  %715 = vmatpush.msra.mxu2 %v674_v40 }
  0x38   : > { %744 = vmatpush.msra.mxu3 %v690_v41  ;;  %716 = vmatpush.msra.mxu2 %v673_v42  ;;  %v670_v42 = vld [vmem:[#allocation2 + $0x18] sm:$0xff] }
  0x3a   : > { %745 = vmatpush.msra.mxu3 %v689_v43  ;;  %717 = vmatpush.msra.mxu2 %v672_v46 }
  0x3c   : > { %746 = vmatpush.msra.mxu3 %v688_v47  ;;  %718 = vmatpush.msra.mxu2 %v671_v48  ;;  %v810_v48 = vld [vmem:[%s1666_s6] sm:$0x1f] }
  0x3d   : > { %1094 = vmatmul.msk.f32.gmra.mxu0 %vm539_vm1, %v481_v10  ;;  %1103 = vmatmul.msk.f32.gmra.mxu1 %vm539_vm1, %v481_v10 }
  0x3e   : > { %747 = vmatpush.msra.mxu3 %v687_v49  ;;  %v487_v49 = vld [vmem:[%s1663_s3] sm:$0xff] }
  0x45   : > { %1095 = vmatmul.msk.f32.gmra.mxu0 %vm539_vm1, %v482_v12  ;;  %1104 = vmatmul.msk.f32.gmra.mxu1 %vm539_vm1, %v482_v12 }
  0x4d   : > { %1096 = vmatmul.msk.f32.gmra.mxu0 %vm539_vm1, %v483_v13  ;;  %1105 = vmatmul.msk.f32.gmra.mxu1 %vm539_vm1, %v483_v13 }
  0x55   : > { %1097 = vmatmul.msk.f32.gmra.mxu0 %vm539_vm1, %v484_v14  ;;  %1106 = vmatmul.msk.f32.gmra.mxu1 %vm539_vm1, %v484_v14 }
  0x5d   : > { %1098 = vmatmul.msk.f32.gmra.mxu0 %vm539_vm1, %v485_v15  ;;  %1107 = vmatmul.msk.f32.gmra.mxu1 %vm539_vm1, %v485_v15 }
  0x8b   : > { %v518_v56 = vpop.permute.xlu0 %517 }
  0x8c   : > { %v528_v6 = vpop.permute.xlu1 %527 }
  0x93   : > { %v523_v63 = vpop.permute.xlu0 %522 }
  0x94   : > { %v533_v13 = vpop.permute.xlu1 %532 }
  0xa2   : > { %v1524_v44 = vpop.f32.mrf.mxu0  ;;  %v1526_v45 = vpop.f32.mrf.mxu1 }
  0xaa   : > { %v1540_v50 = vpop.f32.mrf.mxu0  ;;  %v1542_v51 = vpop.f32.mrf.mxu1 }
  0xb2   : > { %v1544_v52 = vpop.f32.mrf.mxu0  ;;  %v1546_v53 = vpop.f32.mrf.mxu1 }
  0xba   : > { %v1548_v54 = vpop.f32.mrf.mxu0  ;;  %v1550_v55 = vpop.f32.mrf.mxu1 }
  0xc2   : > { %v598_v57 = vpop.f32.mrf.mxu0  ;;  %v639_v58 = vpop.f32.mrf.mxu1 }
  0xc3   : > { %v599_v59 = vadd.f32 %v598_v57, %v518_v56  ;;  %v640_v60 = vadd.f32 %v639_v58, %v518_v56  ;;  %v490_v56 = vld [vmem:[%s1663_s3 + $0x18] sm:$0xff] }
  0xc5   : > { %v659_v61 = vmax.f32 %v599_v59, 0.0  ;;  %v660_v62 = vmax.f32 %v640_v60, 0.0 }
  0xc7   : > { %719 = vmatmul.f32.vlgmr.msra.gmra.mxu2 %v659_v61  ;;  %748 = vmatmul.f32.vlgmr.msra.gmra.mxu3 %v660_v62  ;;  %v843_v61 = vld [vmem:[%s1668_s8] sm:$0xf]  ;;  %v489_v62 = vld [vmem:[%s1663_s3 + $0x10] sm:$0xff] }
  0xca   : > { %v601_v0 = vpop.f32.mrf.mxu0  ;;  %v642_v1 = vpop.f32.mrf.mxu1 }
  0xcb   : > { %v602_v2 = vadd.f32 %v601_v0, %v523_v63  ;;  %v643_v3 = vadd.f32 %v642_v1, %v523_v63  ;;  %v784_v63 = vld [vmem:[%s1664_s4 + $0x18] sm:$0xff] }
  0xcd   : > { %v661_v4 = vmax.f32 %v602_v2, 0.0  ;;  %v662_v5 = vmax.f32 %v643_v3, 0.0  ;;  %v783_v3 = vld [vmem:[%s1664_s4 + $0x10] sm:$0xff] }
  0xcf   : > { %722 = vmatmul.f32.gmra.mxu2 %v661_v4  ;;  %751 = vmatmul.f32.gmra.mxu3 %v662_v5 }
  0xd2   : > { %v604_v7 = vpop.f32.mrf.mxu0  ;;  %v645_v8 = vpop.f32.mrf.mxu1 }
  0xd3   : > { %v605_v9 = vadd.f32 %v604_v7, %v528_v6  ;;  %v646_v10 = vadd.f32 %v645_v8, %v528_v6  ;;  %v782_v8 = vld [vmem:[%s1664_s4 + $0x8] sm:$0xff] }
  0xd5   : > { %v663_v11 = vmax.f32 %v605_v9, 0.0  ;;  %v664_v12 = vmax.f32 %v646_v10, 0.0 }
  0xd7   : > { %725 = vmatmul.f32.gmra.mxu2 %v663_v11  ;;  %754 = vmatmul.f32.gmra.mxu3 %v664_v12  ;;  %v781_v11 = vld [vmem:[%s1664_s4] sm:$0xff] }
  0xda   : > { %v607_v14 = vpop.f32.mrf.mxu0  ;;  %v648_v15 = vpop.f32.mrf.mxu1 }
  0xdb   : > { %v608_v16 = vadd.f32 %v607_v14, %v533_v13  ;;  %v649_v17 = vadd.f32 %v648_v15, %v533_v13  ;;  %v842_v13 = vld [vmem:[%s1667_s7] sm:$0xf] }
  0xdd   : > { %v665_v18 = vmax.f32 %v608_v16, 0.0  ;;  %v666_v19 = vmax.f32 %v649_v17, 0.0 }
  0xdf   : > { %728 = vmatmul.f32.gmra.mxu2 %v665_v18  ;;  %757 = vmatmul.f32.gmra.mxu3 %v666_v19 }
 0x14a   : > { %v720_v21 = vpop.f32.mrf.mxu2  ;;  %v749_v23 = vpop.f32.mrf.mxu3 }
 0x14b   : > { %v750_v24 = vadd.f32 %v749_v23, %v720_v21 }
 0x14d   : > { %v761_v25 = vadd.f32 %v750_v24, %v667_v22 }
 0x14f   : > { %766 = vst.msk [vmem:[#allocation2] sm:$0xff] %vm473_vm2, %v761_v25 }
 0x152   : > { %v723_v26 = vpop.f32.mrf.mxu2  ;;  %v752_v28 = vpop.f32.mrf.mxu3 }
 0x153   : > { %v753_v29 = vadd.f32 %v752_v28, %v723_v26 }
 0x155   : > { %v762_v30 = vadd.f32 %v753_v29, %v668_v27 }
 0x156   : > { %v773_v31 = vld [vmem:[#allocation2] sm:$0xff] }
 0x157   : > { %767 = vst.msk [vmem:[#allocation2 + $0x8] sm:$0xff] %vm473_vm2, %v762_v30  ;;  %v777_v32 = vmul.f32 0.00390625, %v773_v31 }
 0x159   : > { %787 = vperm.xlu1 %1175, %v777_v32  }
 0x15a   : > { %v726_v33 = vpop.f32.mrf.mxu2  ;;  %v755_v35 = vpop.f32.mrf.mxu3 }
 0x15b   : > { %v756_v36 = vadd.f32 %v755_v35, %v726_v33 }
 0x15d   : > { %v763_v37 = vadd.f32 %v756_v36, %v669_v34 }
 0x15e   : > { %v774_v39 = vld [vmem:[#allocation2 + $0x8] sm:$0xff] }
 0x15f   : > { %768 = vst.msk [vmem:[#allocation2 + $0x10] sm:$0xff] %vm473_vm2, %v763_v37  ;;  %v778_v40 = vmul.f32 0.00390625, %v774_v39 }
 0x161   : > { %502 = vperm.xlu1 %1175, %v488_v38   ;;  %792 = vperm.xlu0 %1174, %v778_v40  }
 0x162   : > { %v729_v41 = vpop.f32.mrf.mxu2  ;;  %v758_v43 = vpop.f32.mrf.mxu3 }
 0x163   : > { %v759_v46 = vadd.f32 %v758_v43, %v729_v41 }
 0x165   : > { %v764_v47 = vadd.f32 %v759_v46, %v670_v42 }
 0x166   : > { %v775_v59 = vld [vmem:[#allocation2 + $0x10] sm:$0xff] }
 0x167   : > { %769 = vst.msk [vmem:[#allocation2 + $0x18] sm:$0xff] %vm473_vm2, %v764_v47  ;;  %v779_v60 = vmul.f32 0.00390625, %v775_v59 }
 0x169   : > { %813 = vperm.xlu1 %1175, %v810_v48   ;;  %497 = vperm.xlu0 %1174, %v487_v49  }
 0x16e   : > { %v776_v57 = vld [vmem:[#allocation2 + $0x18] sm:$0xff] }
 0x16f   : > { %v780_v58 = vmul.f32 0.00390625, %v776_v57 }
 0x171   : > { %512 = vperm.xlu0 %1174, %v490_v56   ;;  %802 = vperm.xlu2 %1176, %v780_v58  }
 0x179   : > { %797 = vperm.xlu2 %1176, %v779_v60  }
 0x181   : > { %846 = vperm.xlu2 %1176, %v843_v61  }
 0x189   : > { %507 = vperm.xlu2 %1176, %v489_v62  }
 0x1cb   : > { %v788_v0 = vpop.permute.xlu1 %787  ;;  %v803_v1 = vpop.permute.xlu2 %802 }
 0x1cc   : > { %v808_v2 = vadd.f32 %v803_v1, %v784_v63 }
 0x1ce   : > { %832 = vmatpush.msrb.mxu2 %v808_v2  ;;  %864 = vmatpush.msrb.mxu3 %v808_v2 }
 0x1d3   : > { %v503_v4 = vpop.permute.xlu1 %502  ;;  %v793_v5 = vpop.permute.xlu0 %792 }
 0x1d4   : > { %v590_v6 = vadd.f32 %v1540_v50, %v503_v4  ;;  %v631_v7 = vadd.f32 %v1542_v51, %v503_v4  ;;  %v798_v9 = vpop.permute.xlu2 %797  ;;  %v806_v12 = vadd.f32 %v793_v5, %v782_v8  ;;  %v805_v50 = vadd.f32 %v788_v0, %v781_v11  ;;  %v809_v51 = vld [vmem:[%s1665_s5] sm:$0x1f] }
 0x1d5   : > { %v807_v10 = vadd.f32 %v798_v9, %v783_v3 }
 0x1d6   : > { %653 = vst [vmem:[%s1588_s13 + $0x10] sm:$0xff] %v590_v6 }
 0x1d7   : > { %654 = vst [vmem:[%s1588_s13 + $0x18] sm:$0xff] %v631_v7  ;;  %833 = vmatpush.msrb.mxu2 %v807_v10  ;;  %865 = vmatpush.msrb.mxu3 %v807_v10 }
 0x1d9   : > { %834 = vmatpush.msrb.mxu2 %v806_v12  ;;  %866 = vmatpush.msrb.mxu3 %v806_v12 }
 0x1db   : > { %835 = vmatpush.msrb.mxu2 %v805_v50  ;;  %867 = vmatpush.msrb.mxu3 %v805_v50  ;;  %v498_v14 = vpop.permute.xlu0 %497 }
 0x1dc   : > { %v587_v15 = vadd.f32 %v1524_v44, %v498_v14  ;;  %v628_v16 = vadd.f32 %v1526_v45, %v498_v14  ;;  %1108 = vmatmul.msk.f32.vlgmr.msrb.gmra.mxu2 %vm816_vm3, %v809_v51  ;;  %1109 = vmatmul.msk.f32.vlgmr.msrb.gmra.mxu3 %vm816_vm3, %v842_v13  ;;  %v847_v17 = vpop.permute.xlu2 %846  ;;  %v814_v44 = vpop.permute.xlu1 %813 }
 0x1de   : > { %651 = vst [vmem:[%s1588_s13] sm:$0xff] %v587_v15 }
 0x1df   : > { %652 = vst [vmem:[%s1588_s13 + $0x8] sm:$0xff] %v628_v16 }
 0x1e3   : > { %v513_v18 = vpop.permute.xlu0 %512 }
 0x1e4   : > { %v596_v19 = vadd.f32 %v1548_v54, %v513_v18  ;;  %v637_v20 = vadd.f32 %v1550_v55, %v513_v18  ;;  %v508_v21 = vpop.permute.xlu2 %507 }
 0x1e5   : > { %v593_v22 = vadd.f32 %v1544_v52, %v508_v21  ;;  %v634_v23 = vadd.f32 %v1546_v53, %v508_v21 }
 0x1e6   : > { %657 = vst [vmem:[%s1588_s13 + $0x30] sm:$0x7] %v596_v19 }
 0x1e7   : > { %658 = vst [vmem:[%s1588_s13 + $0x38] sm:$0x7] %v637_v20 }
 0x1e8   : > { %655 = vst [vmem:[%s1588_s13 + $0x20] sm:$0xff] %v593_v22 }
 0x1e9   : > { %656 = vst [vmem:[%s1588_s13 + $0x28] sm:$0xff] %v634_v23  ;;  %s1084_s13 = sshll.u32 %s436_s23, 2 }
 0x1ea   : > { %s438_s26 = scalar_lea.vmem [#allocation3], %s1084_s13 }
 0x1eb   : > { %s926_s28 = sshll.u32 %s438_s26, 4  ;;  %s927_s28 = int_to_ptr.vmem [resolvable:$true] %s926_s28 }
 0x25f   : > { %v837_v45 = vpop.f32.mrf.mxu2  ;;  %v869_v54 = vpop.f32.mrf.mxu3 }
 0x260   : > { %v838_v55 = vadd.f32 %v837_v45, %v814_v44  ;;  %v870_v24 = vadd.f32 %v869_v54, %v847_v17 }
 0x262   : > { %841 = vst.msk [vmem:[%s468_s16] sm:$0x1f] %vm840_vm4, %v838_v55  ;;  %v1110_v52 = vmul.f32 -1.442695, %v870_v24  ;;  %s1197_s16 = scalar_lea.hbm %s1196_s15, 4 }
 0x263   : > { %p1198_p12 = scmp.ne.s32.totalorder %s1196_s15, %s1197_s16  ;;  %p1203_p2 = scmp.lt.s32.totalorder %s1201_s0, %s1197_s16 }
 0x264   : > { %1177 = vpow2.f32 %v1110_v52 }
 0x265   : > { %p1199_p13 = pnand %p1198_p12, %p1363_p4  ;;  %p1204_p3 = por %p1203_p2, %p1202_p1 }
 0x267   : > { %p1200_p0 = pneg %p1199_p13 }
 0x269   : > { %p1205_p5 = pnand %p1204_p3, %p1200_p0 }
 0x26a   : > { %v1178_v53 = vpop.eup %1177 }
 0x26b   : > { %v875_v25 = vadd.f32 1.0, %v1178_v53 }
 0x26d   : > { %1179 = vrcp.f32 %v875_v25  ;;  %v887_v29 = vand.u32 2147483648, %v875_v25  ;;  %v885_v31 = vand.u32 2147483647, %v875_v25  ;;  %vm881_vm6 = vweird.f32 %v875_v25 }
 0x26f   : > { %v888_v33 = vor.u32 1.1754944e-38, %v887_v29  ;;  %vm886_vm9 = vcmp.eq.f32.partialorder %v885_v31, 8.507059e+37 }
 0x273   : > { %v1180_v26 = vpop.eup %1179 }
 0x274   : > { %v877_v27 = vmul.f32 %v1180_v26, %v875_v25  ;;  %vm882_vm5 = vweird.f32 %v1180_v26 }
 0x275   : > { %vm883_vm7 = vmor %vm881_vm6, %vm882_vm5 }
 0x276   : > { %v878_v28 = vsub.f32 1.0, %v877_v27 }
 0x278   : > { %v879_v30 = vmul.f32 %v1180_v26, %v878_v28 }
 0x27a   : > { %v880_v32 = vadd.f32 %v1180_v26, %v879_v30 }
 0x27c   : > { %v884_v34 = vsel %vm883_vm7, %v1180_v26, %v880_v32 }
 0x27d   : > { %v889_v35 = vsel %vm886_vm9, %v888_v33, %v884_v34 }
 0x27e   : > { %892 = vst.msk [vmem:[%s438_s26] sm:$0xf] %vm891_vm8, %v889_v35 }
 0x27f   : > { %1208 = shalt.err (!%p1205_p5)
}
 0x280   : > { %1117 = dma.vmem_to_hbm [thread:$0]  (%p1363_p4), %s927_s28, 64, %s929_s14, %s907_s20  }
 0x281 PF: > { %p1123_p6 = scmp.ge.s32.totalorder %s1259_s22, 2  ;;  %s959_s23 = sand.u32 1, %s1239_s17  }
 0x282   : > { %s960_s26 = scalar_lea.sflag [#allocation4], %s959_s23 }
 0x283   : > { %p1120_p7 = pnand %p1123_p6, %p1370_p8 }
 0x285   : > { %p1121_p9 = pneg %p1120_p7 }
 0x287   : > { %1234 = dma.done.wait (%p1121_p9), %s960_s26, 64  }
 0x288   : > { %1236 = vsyncadd (%p1121_p9), %s960_s26, 4294967232  ;;  %s25_s22 = sadd.s32 1, %s1259_s22   ;;  %s1680_s17 = smov %s1243_s18 }
 0x289   : > { %p22_p10 = scmp.ge.s32.totalorder %s25_s22, 4   ;;  %s1681_s18 = smov %s1247_s19 }
 0x28a   : > { %s1682_s19 = smov %s1376_s30  ;;  %s1683_s20 = smov %s1255_s21 }
 0x28b   : > { %s1684_s21 = smov %s1686_s25  ;;  %24 = sbr.rel (!%p22_p10) target bundleno = 7 (0x7), region = 126 }
 0x290   :  { %966 = vsyncpa [#allocation4], 1 }
 0x291   :  { %968 = vsyncpa [#allocation4 + $0x1], 1 }

</bundles_post_ra>
